<compile_context>
chip_gen: v5e
topology: v5e:2x2
jax: 0.10.0
libtpu: 0.0.40
codegen_flags: <defaults>
</compile_context>

<pallas_src>
import math
import functools

import jax
import jax.numpy as jnp
from jax.experimental import pallas as pl
from jax.experimental.pallas import tpu as pltpu


def _attention_kernel(x_ref, wqkv_ref, wproj_ref, o_ref, *,
                      n_head, head_dim, batch, seq):
    # x_ref:     (B*T, C)  bf16   flattened activations
    # wqkv_ref:  (C, 3C)   bf16   pre-transposed QKV weight; q cols pre-scaled
    # wproj_ref: (C, C)    bf16   pre-transposed proj weight
    # o_ref:     (B*T, C)  f32    output
    B, T, hd = batch, seq, head_dim
    C = n_head * head_dim

    # --- QKV projection: one (B*T, C) x (C, 3C) MXU matmul, f32 accumulate ---
    # 1/sqrt(hd) already folded into the q columns of wqkv (wrapper-side).
    qkv = jnp.dot(x_ref[...], wqkv_ref[...],
                  preferred_element_type=jnp.float32)           # (B*T, 3C) f32

    # Single whole-slab bf16 cast (replaces 12 per-head (B,T,hd) casts).
    qkv_bf = qkv.astype(jnp.bfloat16)                           # (B*T, 3C)

    # Causal mask, built once (TPU iota must be >= 2D).
    row_ids = jax.lax.broadcasted_iota(jnp.int32, (B, T, T), 1)
    col_ids = jax.lax.broadcasted_iota(jnp.int32, (B, T, T), 2)
    causal = col_ids <= row_ids                                 # (B, T, T)
    neg_inf = jnp.float32(-1e30)

    # Output-projection accumulator kept in f32; head outputs feed the proj
    # matmul directly (no merged VMEM scratch, no masked lane stores).
    y = jnp.zeros((B * T, C), dtype=jnp.float32)

    # --- per-head causal attention, batched over B with 3-D einsums ---
    for h in range(n_head):
        lo = h * hd
        qh = qkv_bf[:, 0 * C + lo:0 * C + lo + hd].reshape(B, T, hd)
        kh = qkv_bf[:, 1 * C + lo:1 * C + lo + hd].reshape(B, T, hd)
        vh = qkv_bf[:, 2 * C + lo:2 * C + lo + hd].reshape(B, T, hd)

        # scores: batched q @ k^T; K feeds the contraction (no XLU transpose)
        att = jnp.einsum("bqd,bkd->bqk", qh, kh,
                         preferred_element_type=jnp.float32)    # (B, T, T) f32
        att = jnp.where(causal, att, neg_inf)

        # numerically stable softmax, kept entirely in f32
        att_max = jnp.max(att, axis=-1, keepdims=True)
        p = jnp.exp(att - att_max)
        denom = jnp.sum(p, axis=-1, keepdims=True)
        p = p * pl.reciprocal(denom, approx=True)

        oh = jnp.einsum("bqk,bkd->bqd", p.astype(jnp.bfloat16), vh,
                        preferred_element_type=jnp.float32)     # (B, T, hd) f32

        # Fold this head straight into the output projection:
        #   y += oh @ wproj[lo:lo+hd, :]   (sublane-aligned 8-row weight slice)
        y = y + jnp.dot(oh.reshape(B * T, hd).astype(jnp.bfloat16),
                        wproj_ref[lo:lo + hd, :],
                        preferred_element_type=jnp.float32)

    # Note: last dim is C=32 < 128 lanes -> masked store; acceptable at this
    # size (see lane-dense TODO above for scaled-up C).
    o_ref[...] = y.astype(o_ref.dtype)


def self_attention_pallas(x, w_qkv, w_proj, *, n_head):
    """x: (B, T, C) f32; w_qkv: (3C, C) PyTorch Linear layout; w_proj: (C, C)."""
    B, T, C = x.shape
    assert C % n_head == 0
    assert T % 8 == 0, "sequence length must be sublane (8) aligned"
    head_dim = C // n_head

    # Flatten batch*seq; cast MXU operands to bf16 (f32 accumulation preserved
    # inside the kernel via preferred_element_type).
    x_flat = jnp.asarray(x, jnp.float32).reshape(B * T, C).astype(jnp.bfloat16)

    # PyTorch Linear computes x @ W.T.  Fold the 1/sqrt(head_dim) attention
    # scale into the q rows of the QKV weight before transpose+cast: a one-time
    # constant (weight) transform, not an activation pre-scale.
    scale = 1.0 / math.sqrt(head_dim)
    w_qkv_f = jnp.asarray(w_qkv, jnp.float32)
    w_qkv_f = w_qkv_f.at[:C, :].multiply(scale)
    wqkv_t = w_qkv_f.T.astype(jnp.bfloat16)                       # (C, 3C)
    wproj_t = jnp.asarray(w_proj, jnp.float32).T.astype(jnp.bfloat16)  # (C, C)

    kernel = functools.partial(_attention_kernel, n_head=n_head,
                               head_dim=head_dim, batch=B, seq=T)

    out_flat = pl.pallas_call(
        kernel,
        out_shape=jax.ShapeDtypeStruct((B * T, C), jnp.float32),
        grid_spec=pltpu.PrefetchScalarGridSpec(
            num_scalar_prefetch=0,
            grid=(1,),  # single TC step; everything fits VMEM at this size
            in_specs=[
                pl.BlockSpec((B * T, C), lambda i: (0, 0)),
                pl.BlockSpec((C, 3 * C), lambda i: (0, 0)),
                pl.BlockSpec((C, C), lambda i: (0, 0)),
            ],
            out_specs=pl.BlockSpec((B * T, C), lambda i: (0, 0)),
        ),
        compiler_params=pltpu.CompilerParams(
            dimension_semantics=("arbitrary",)),
    )(x_flat, wqkv_t, wproj_t)

    return out_flat.reshape(B, T, C)


def self_attention_ref(x, w_qkv, w_proj, *, n_head):
    """Pure-JAX f32 reference mirroring the PyTorch forward (eval mode)."""
    B, T, C = x.shape
    hd = C // n_head
    qkv = jnp.einsum("btc,oc->bto", x, w_qkv)                 # (B, T, 3C)
    q, k, v = jnp.split(qkv, 3, axis=-1)
    q = q.reshape(B, T, n_head, hd).transpose(0, 2, 1, 3)
    k = k.reshape(B, T, n_head, hd).transpose(0, 2, 1, 3)
    v = v.reshape(B, T, n_head, hd).transpose(0, 2, 1, 3)
    att = jnp.einsum("bhqd,bhkd->bhqk", q, k) / math.sqrt(hd)
    mask = jnp.triu(jnp.full((T, T), -jnp.inf), k=1)
    att = att + mask[None, None]
    att = jax.nn.softmax(att, axis=-1)
    out = jnp.einsum("bhqk,bhkd->bhqd", att, v)
    out = out.transpose(0, 2, 1, 3).reshape(B, T, C)
    return jnp.einsum("btc,oc->bto", out, w_proj)


if __name__ == "__main__":
    # Config: n_head=4, n_embd=32, n_blocksize=16, dropout_rate=0.0, no bias.
    B, T, C, n_head = 2, 16, 32, 4

    key = jax.random.PRNGKey(0)
    kx, kqkv, kproj = jax.random.split(key, 3)

    x = jax.random.normal(kx, (B, T, C), dtype=jnp.float32)
    # Deterministic "Linear"-style init (uniform +/- 1/sqrt(fan_in)), bias=False.
    bound = 1.0 / math.sqrt(C)
    w_qkv = jax.random.uniform(kqkv, (3 * C, C), jnp.float32, -bound, bound)
    w_proj = jax.random.uniform(kproj, (C, C), jnp.float32, -bound, bound)

    out = self_attention_pallas(x, w_qkv, w_proj, n_head=n_head)
    out = jax.block_until_ready(out)

    ref = self_attention_ref(x, w_qkv, w_proj, n_head=n_head)
    assert out.shape == (B, T, C)
    # Tolerance loosened (bf16 MXU operands, f32 accumulation, approx recip).
    assert jnp.allclose(out, ref, atol=2e-2, rtol=2e-2), \
        f"max err {jnp.max(jnp.abs(out - ref))}"

    print("KERNEL_OK")
</pallas_src>

<mosaic_0001>
module attributes {stable_mosaic.version = 11 : i64} {
  func.func @_attention_kernel(%arg0: i32, %arg1: memref<32x32xbf16, #tpu.memory_space<vmem>>, %arg2: memref<32x96xbf16, #tpu.memory_space<vmem>>, %arg3: memref<32x32xbf16, #tpu.memory_space<vmem>>, %arg4: memref<32x32xf32, #tpu.memory_space<vmem>>) attributes {dimension_semantics = [#tpu.dimension_semantics<arbitrary>], iteration_bounds = array<i64: 1>, scalar_prefetch = 0 : i64, scratch_operands = 0 : i64, tpu.core_type = #tpu.core_type<tc>, window_params = [{pipeline_mode = #tpu.pipeline_mode<synchronous>, transform_indices = @transform_0, window_bounds = array<i64: 32, 32>}, {pipeline_mode = #tpu.pipeline_mode<synchronous>, transform_indices = @transform_1, window_bounds = array<i64: 32, 96>}, {pipeline_mode = #tpu.pipeline_mode<synchronous>, transform_indices = @transform_2, window_bounds = array<i64: 32, 32>}, {pipeline_mode = #tpu.pipeline_mode<synchronous>, transform_indices = @transform_3, window_bounds = array<i64: 32, 32>}]} {
    %c0 = arith.constant 0 : index
    %c0_0 = arith.constant 0 : index
    %0 = vector.load %arg1[%c0, %c0_0] : memref<32x32xbf16, #tpu.memory_space<vmem>>, vector<32x32xbf16>
    %c0_1 = arith.constant 0 : index
    %c0_2 = arith.constant 0 : index
    %1 = vector.load %arg2[%c0_1, %c0_2] : memref<32x96xbf16, #tpu.memory_space<vmem>>, vector<32x96xbf16>
    %cst = arith.constant dense<0.000000e+00> : vector<32x96xf32>
    %2 = tpu.matmul %0, %1, %cst {dimension_numbers = #tpu.dot_dimension_numbers<[1], [0], [0], [1], [0, 0, 1, 1], [], []>} : vector<32x32xbf16>, vector<32x96xbf16>, vector<32x96xf32> -> vector<32x96xf32>
    %3 = arith.truncf %2 : vector<32x96xf32> to vector<32x96xbf16>
    %4 = tpu.iota {dimensions = array<i32: 1>} : vector<2x16x16xi32>
    %5 = tpu.iota {dimensions = array<i32: 2>} : vector<2x16x16xi32>
    %6 = arith.cmpi sle, %5, %4 : vector<2x16x16xi32>
    %cst_3 = arith.constant 0.000000e+00 : f32
    %7 = vector.broadcast %cst_3 : f32 to vector<32x32xf32>
    %8 = vector.extract_strided_slice %3 {offsets = [0, 0], sizes = [32, 8], strides = [1, 1]} : vector<32x96xbf16> to vector<32x8xbf16>
    %9 = vector.shape_cast %8 : vector<32x8xbf16> to vector<2x16x8xbf16>
    %10 = vector.extract_strided_slice %3 {offsets = [0, 32], sizes = [32, 8], strides = [1, 1]} : vector<32x96xbf16> to vector<32x8xbf16>
    %11 = vector.shape_cast %10 : vector<32x8xbf16> to vector<2x16x8xbf16>
    %12 = vector.extract_strided_slice %3 {offsets = [0, 64], sizes = [32, 8], strides = [1, 1]} : vector<32x96xbf16> to vector<32x8xbf16>
    %13 = vector.shape_cast %12 : vector<32x8xbf16> to vector<2x16x8xbf16>
    "tpu.trace_start"() <{level = 10 : i32, message = "bqd,bkd->bqk"}> : () -> ()
    %cst_4 = arith.constant dense<0.000000e+00> : vector<2x16x16xf32>
    %14 = tpu.matmul %9, %11, %cst_4 {dimension_numbers = #tpu.dot_dimension_numbers<[2], [2], [1], [1], [0, 0, 0, 1, 1, 1], [0], [0]>} : vector<2x16x8xbf16>, vector<2x16x8xbf16>, vector<2x16x16xf32> -> vector<2x16x16xf32>
    %cst_5 = arith.constant -1.000000e+30 : f32
    "tpu.trace_stop"() : () -> ()
    %15 = vector.broadcast %cst_5 : f32 to vector<2x16x16xf32>
    %16 = arith.select %6, %14, %15 : vector<2x16x16xi1>, vector<2x16x16xf32>
    %cst_6 = arith.constant dense<0xFF800000> : vector<2x16xf32>
    %17 = vector.multi_reduction <maximumf>, %16, %cst_6 [2] : vector<2x16x16xf32> to vector<2x16xf32>
    %18 = vector.shape_cast %17 : vector<2x16xf32> to vector<2x16x1xf32>
    %19 = vector.broadcast %18 : vector<2x16x1xf32> to vector<2x16x16xf32>
    %20 = arith.subf %16, %19 : vector<2x16x16xf32>
    %21 = math.exp %20 : vector<2x16x16xf32>
    %cst_7 = arith.constant dense<0.000000e+00> : vector<2x16xf32>
    %22 = vector.multi_reduction <add>, %21, %cst_7 [2] : vector<2x16x16xf32> to vector<2x16xf32>
    %23 = vector.shape_cast %22 : vector<2x16xf32> to vector<2x16x1xf32>
    %24 = tpu.reciprocal %23 {approx = true} : vector<2x16x1xf32> -> vector<2x16x1xf32>
    %25 = vector.broadcast %24 : vector<2x16x1xf32> to vector<2x16x16xf32>
    %26 = arith.mulf %21, %25 : vector<2x16x16xf32>
    %27 = arith.truncf %26 : vector<2x16x16xf32> to vector<2x16x16xbf16>
    "tpu.trace_start"() <{level = 10 : i32, message = "bqk,bkd->bqd"}> : () -> ()
    %cst_8 = arith.constant dense<0.000000e+00> : vector<2x16x8xf32>
    %28 = tpu.matmul %27, %13, %cst_8 {dimension_numbers = #tpu.dot_dimension_numbers<[2], [1], [1], [2], [0, 0, 0, 1, 1, 2], [0], [0]>} : vector<2x16x16xbf16>, vector<2x16x8xbf16>, vector<2x16x8xf32> -> vector<2x16x8xf32>
    "tpu.trace_stop"() : () -> ()
    %29 = vector.shape_cast %28 : vector<2x16x8xf32> to vector<32x8xf32>
    %30 = arith.truncf %29 : vector<32x8xf32> to vector<32x8xbf16>
    %c0_9 = arith.constant 0 : index
    %c0_10 = arith.constant 0 : index
    %31 = vector.load %arg3[%c0_9, %c0_10] : memref<32x32xbf16, #tpu.memory_space<vmem>>, vector<8x32xbf16>
    %cst_11 = arith.constant dense<0.000000e+00> : vector<32x32xf32>
    %32 = tpu.matmul %30, %31, %cst_11 {dimension_numbers = #tpu.dot_dimension_numbers<[1], [0], [0], [1], [0, 0, 1, 1], [], []>} : vector<32x8xbf16>, vector<8x32xbf16>, vector<32x32xf32> -> vector<32x32xf32>
    %33 = arith.addf %7, %32 : vector<32x32xf32>
    %34 = vector.extract_strided_slice %3 {offsets = [0, 8], sizes = [32, 8], strides = [1, 1]} : vector<32x96xbf16> to vector<32x8xbf16>
    %35 = vector.shape_cast %34 : vector<32x8xbf16> to vector<2x16x8xbf16>
    %36 = vector.extract_strided_slice %3 {offsets = [0, 40], sizes = [32, 8], strides = [1, 1]} : vector<32x96xbf16> to vector<32x8xbf16>
    %37 = vector.shape_cast %36 : vector<32x8xbf16> to vector<2x16x8xbf16>
    %38 = vector.extract_strided_slice %3 {offsets = [0, 72], sizes = [32, 8], strides = [1, 1]} : vector<32x96xbf16> to vector<32x8xbf16>
    %39 = vector.shape_cast %38 : vector<32x8xbf16> to vector<2x16x8xbf16>
    "tpu.trace_start"() <{level = 10 : i32, message = "bqd,bkd->bqk"}> : () -> ()
    %cst_12 = arith.constant dense<0.000000e+00> : vector<2x16x16xf32>
    %40 = tpu.matmul %35, %37, %cst_12 {dimension_numbers = #tpu.dot_dimension_numbers<[2], [2], [1], [1], [0, 0, 0, 1, 1, 1], [0], [0]>} : vector<2x16x8xbf16>, vector<2x16x8xbf16>, vector<2x16x16xf32> -> vector<2x16x16xf32>
    %cst_13 = arith.constant -1.000000e+30 : f32
    "tpu.trace_stop"() : () -> ()
    %41 = vector.broadcast %cst_13 : f32 to vector<2x16x16xf32>
    %42 = arith.select %6, %40, %41 : vector<2x16x16xi1>, vector<2x16x16xf32>
    %cst_14 = arith.constant dense<0xFF800000> : vector<2x16xf32>
    %43 = vector.multi_reduction <maximumf>, %42, %cst_14 [2] : vector<2x16x16xf32> to vector<2x16xf32>
    %44 = vector.shape_cast %43 : vector<2x16xf32> to vector<2x16x1xf32>
    %45 = vector.broadcast %44 : vector<2x16x1xf32> to vector<2x16x16xf32>
    %46 = arith.subf %42, %45 : vector<2x16x16xf32>
    %47 = math.exp %46 : vector<2x16x16xf32>
    %cst_15 = arith.constant dense<0.000000e+00> : vector<2x16xf32>
    %48 = vector.multi_reduction <add>, %47, %cst_15 [2] : vector<2x16x16xf32> to vector<2x16xf32>
    %49 = vector.shape_cast %48 : vector<2x16xf32> to vector<2x16x1xf32>
    %50 = tpu.reciprocal %49 {approx = true} : vector<2x16x1xf32> -> vector<2x16x1xf32>
    %51 = vector.broadcast %50 : vector<2x16x1xf32> to vector<2x16x16xf32>
    %52 = arith.mulf %47, %51 : vector<2x16x16xf32>
    %53 = arith.truncf %52 : vector<2x16x16xf32> to vector<2x16x16xbf16>
    "tpu.trace_start"() <{level = 10 : i32, message = "bqk,bkd->bqd"}> : () -> ()
    %cst_16 = arith.constant dense<0.000000e+00> : vector<2x16x8xf32>
    %54 = tpu.matmul %53, %39, %cst_16 {dimension_numbers = #tpu.dot_dimension_numbers<[2], [1], [1], [2], [0, 0, 0, 1, 1, 2], [0], [0]>} : vector<2x16x16xbf16>, vector<2x16x8xbf16>, vector<2x16x8xf32> -> vector<2x16x8xf32>
    "tpu.trace_stop"() : () -> ()
    %55 = vector.shape_cast %54 : vector<2x16x8xf32> to vector<32x8xf32>
    %56 = arith.truncf %55 : vector<32x8xf32> to vector<32x8xbf16>
    %c8 = arith.constant 8 : index
    %c0_17 = arith.constant 0 : index
    %57 = vector.load %arg3[%c8, %c0_17] : memref<32x32xbf16, #tpu.memory_space<vmem>>, vector<8x32xbf16>
    %cst_18 = arith.constant dense<0.000000e+00> : vector<32x32xf32>
    %58 = tpu.matmul %56, %57, %cst_18 {dimension_numbers = #tpu.dot_dimension_numbers<[1], [0], [0], [1], [0, 0, 1, 1], [], []>} : vector<32x8xbf16>, vector<8x32xbf16>, vector<32x32xf32> -> vector<32x32xf32>
    %59 = arith.addf %33, %58 : vector<32x32xf32>
    %60 = vector.extract_strided_slice %3 {offsets = [0, 16], sizes = [32, 8], strides = [1, 1]} : vector<32x96xbf16> to vector<32x8xbf16>
    %61 = vector.shape_cast %60 : vector<32x8xbf16> to vector<2x16x8xbf16>
    %62 = vector.extract_strided_slice %3 {offsets = [0, 48], sizes = [32, 8], strides = [1, 1]} : vector<32x96xbf16> to vector<32x8xbf16>
    %63 = vector.shape_cast %62 : vector<32x8xbf16> to vector<2x16x8xbf16>
    %64 = vector.extract_strided_slice %3 {offsets = [0, 80], sizes = [32, 8], strides = [1, 1]} : vector<32x96xbf16> to vector<32x8xbf16>
    %65 = vector.shape_cast %64 : vector<32x8xbf16> to vector<2x16x8xbf16>
    "tpu.trace_start"() <{level = 10 : i32, message = "bqd,bkd->bqk"}> : () -> ()
    %cst_19 = arith.constant dense<0.000000e+00> : vector<2x16x16xf32>
    %66 = tpu.matmul %61, %63, %cst_19 {dimension_numbers = #tpu.dot_dimension_numbers<[2], [2], [1], [1], [0, 0, 0, 1, 1, 1], [0], [0]>} : vector<2x16x8xbf16>, vector<2x16x8xbf16>, vector<2x16x16xf32> -> vector<2x16x16xf32>
    %cst_20 = arith.constant -1.000000e+30 : f32
    "tpu.trace_stop"() : () -> ()
    %67 = vector.broadcast %cst_20 : f32 to vector<2x16x16xf32>
    %68 = arith.select %6, %66, %67 : vector<2x16x16xi1>, vector<2x16x16xf32>
    %cst_21 = arith.constant dense<0xFF800000> : vector<2x16xf32>
    %69 = vector.multi_reduction <maximumf>, %68, %cst_21 [2] : vector<2x16x16xf32> to vector<2x16xf32>
    %70 = vector.shape_cast %69 : vector<2x16xf32> to vector<2x16x1xf32>
    %71 = vector.broadcast %70 : vector<2x16x1xf32> to vector<2x16x16xf32>
    %72 = arith.subf %68, %71 : vector<2x16x16xf32>
    %73 = math.exp %72 : vector<2x16x16xf32>
    %cst_22 = arith.constant dense<0.000000e+00> : vector<2x16xf32>
    %74 = vector.multi_reduction <add>, %73, %cst_22 [2] : vector<2x16x16xf32> to vector<2x16xf32>
    %75 = vector.shape_cast %74 : vector<2x16xf32> to vector<2x16x1xf32>
    %76 = tpu.reciprocal %75 {approx = true} : vector<2x16x1xf32> -> vector<2x16x1xf32>
    %77 = vector.broadcast %76 : vector<2x16x1xf32> to vector<2x16x16xf32>
    %78 = arith.mulf %73, %77 : vector<2x16x16xf32>
    %79 = arith.truncf %78 : vector<2x16x16xf32> to vector<2x16x16xbf16>
    "tpu.trace_start"() <{level = 10 : i32, message = "bqk,bkd->bqd"}> : () -> ()
    %cst_23 = arith.constant dense<0.000000e+00> : vector<2x16x8xf32>
    %80 = tpu.matmul %79, %65, %cst_23 {dimension_numbers = #tpu.dot_dimension_numbers<[2], [1], [1], [2], [0, 0, 0, 1, 1, 2], [0], [0]>} : vector<2x16x16xbf16>, vector<2x16x8xbf16>, vector<2x16x8xf32> -> vector<2x16x8xf32>
    "tpu.trace_stop"() : () -> ()
    %81 = vector.shape_cast %80 : vector<2x16x8xf32> to vector<32x8xf32>
    %82 = arith.truncf %81 : vector<32x8xf32> to vector<32x8xbf16>
    %c16 = arith.constant 16 : index
    %c0_24 = arith.constant 0 : index
    %83 = vector.load %arg3[%c16, %c0_24] : memref<32x32xbf16, #tpu.memory_space<vmem>>, vector<8x32xbf16>
    %cst_25 = arith.constant dense<0.000000e+00> : vector<32x32xf32>
    %84 = tpu.matmul %82, %83, %cst_25 {dimension_numbers = #tpu.dot_dimension_numbers<[1], [0], [0], [1], [0, 0, 1, 1], [], []>} : vector<32x8xbf16>, vector<8x32xbf16>, vector<32x32xf32> -> vector<32x32xf32>
    %85 = arith.addf %59, %84 : vector<32x32xf32>
    %86 = vector.extract_strided_slice %3 {offsets = [0, 24], sizes = [32, 8], strides = [1, 1]} : vector<32x96xbf16> to vector<32x8xbf16>
    %87 = vector.shape_cast %86 : vector<32x8xbf16> to vector<2x16x8xbf16>
    %88 = vector.extract_strided_slice %3 {offsets = [0, 56], sizes = [32, 8], strides = [1, 1]} : vector<32x96xbf16> to vector<32x8xbf16>
    %89 = vector.shape_cast %88 : vector<32x8xbf16> to vector<2x16x8xbf16>
    %90 = vector.extract_strided_slice %3 {offsets = [0, 88], sizes = [32, 8], strides = [1, 1]} : vector<32x96xbf16> to vector<32x8xbf16>
    %91 = vector.shape_cast %90 : vector<32x8xbf16> to vector<2x16x8xbf16>
    "tpu.trace_start"() <{level = 10 : i32, message = "bqd,bkd->bqk"}> : () -> ()
    %cst_26 = arith.constant dense<0.000000e+00> : vector<2x16x16xf32>
    %92 = tpu.matmul %87, %89, %cst_26 {dimension_numbers = #tpu.dot_dimension_numbers<[2], [2], [1], [1], [0, 0, 0, 1, 1, 1], [0], [0]>} : vector<2x16x8xbf16>, vector<2x16x8xbf16>, vector<2x16x16xf32> -> vector<2x16x16xf32>
    %cst_27 = arith.constant -1.000000e+30 : f32
    "tpu.trace_stop"() : () -> ()
    %93 = vector.broadcast %cst_27 : f32 to vector<2x16x16xf32>
    %94 = arith.select %6, %92, %93 : vector<2x16x16xi1>, vector<2x16x16xf32>
    %cst_28 = arith.constant dense<0xFF800000> : vector<2x16xf32>
    %95 = vector.multi_reduction <maximumf>, %94, %cst_28 [2] : vector<2x16x16xf32> to vector<2x16xf32>
    %96 = vector.shape_cast %95 : vector<2x16xf32> to vector<2x16x1xf32>
    %97 = vector.broadcast %96 : vector<2x16x1xf32> to vector<2x16x16xf32>
    %98 = arith.subf %94, %97 : vector<2x16x16xf32>
    %99 = math.exp %98 : vector<2x16x16xf32>
    %cst_29 = arith.constant dense<0.000000e+00> : vector<2x16xf32>
    %100 = vector.multi_reduction <add>, %99, %cst_29 [2] : vector<2x16x16xf32> to vector<2x16xf32>
    %101 = vector.shape_cast %100 : vector<2x16xf32> to vector<2x16x1xf32>
    %102 = tpu.reciprocal %101 {approx = true} : vector<2x16x1xf32> -> vector<2x16x1xf32>
    %103 = vector.broadcast %102 : vector<2x16x1xf32> to vector<2x16x16xf32>
    %104 = arith.mulf %99, %103 : vector<2x16x16xf32>
    %105 = arith.truncf %104 : vector<2x16x16xf32> to vector<2x16x16xbf16>
    "tpu.trace_start"() <{level = 10 : i32, message = "bqk,bkd->bqd"}> : () -> ()
    %cst_30 = arith.constant dense<0.000000e+00> : vector<2x16x8xf32>
    %106 = tpu.matmul %105, %91, %cst_30 {dimension_numbers = #tpu.dot_dimension_numbers<[2], [1], [1], [2], [0, 0, 0, 1, 1, 2], [0], [0]>} : vector<2x16x16xbf16>, vector<2x16x8xbf16>, vector<2x16x8xf32> -> vector<2x16x8xf32>
    "tpu.trace_stop"() : () -> ()
    %107 = vector.shape_cast %106 : vector<2x16x8xf32> to vector<32x8xf32>
    %108 = arith.truncf %107 : vector<32x8xf32> to vector<32x8xbf16>
    %c24 = arith.constant 24 : index
    %c0_31 = arith.constant 0 : index
    %109 = vector.load %arg3[%c24, %c0_31] : memref<32x32xbf16, #tpu.memory_space<vmem>>, vector<8x32xbf16>
    %cst_32 = arith.constant dense<0.000000e+00> : vector<32x32xf32>
    %110 = tpu.matmul %108, %109, %cst_32 {dimension_numbers = #tpu.dot_dimension_numbers<[1], [0], [0], [1], [0, 0, 1, 1], [], []>} : vector<32x8xbf16>, vector<8x32xbf16>, vector<32x32xf32> -> vector<32x32xf32>
    %111 = arith.addf %85, %110 : vector<32x32xf32>
    %c0_33 = arith.constant 0 : index
    %c0_34 = arith.constant 0 : index
    %112 = vector.load %arg4[%c0_33, %c0_34] : memref<32x32xf32, #tpu.memory_space<vmem>>, vector<32x32xf32>
    tpu.vector_store %arg4[%c0_33, %c0_34], %111 {strides = array<i32>} : memref<32x32xf32, #tpu.memory_space<vmem>>, vector<32x32xf32>,
    return
  }
  func.func @transform_0(%arg0: i32) -> (i32, i32) {
    %c0_i32 = arith.constant 0 : i32
    %c0_i32_0 = arith.constant 0 : i32
    %c0_i32_1 = arith.constant 0 : i32
    return %c0_i32, %c0_i32_0 : i32, i32
  }
  func.func @transform_1(%arg0: i32) -> (i32, i32) {
    %c0_i32 = arith.constant 0 : i32
    %c0_i32_0 = arith.constant 0 : i32
    %c0_i32_1 = arith.constant 0 : i32
    return %c0_i32, %c0_i32_0 : i32, i32
  }
  func.func @transform_2(%arg0: i32) -> (i32, i32) {
    %c0_i32 = arith.constant 0 : i32
    %c0_i32_0 = arith.constant 0 : i32
    %c0_i32_1 = arith.constant 0 : i32
    return %c0_i32, %c0_i32_0 : i32, i32
  }
  func.func @transform_3(%arg0: i32) -> (i32, i32) {
    %c0_i32 = arith.constant 0 : i32
    %c0_i32_0 = arith.constant 0 : i32
    %c0_i32_1 = arith.constant 0 : i32
    return %c0_i32, %c0_i32_0 : i32, i32
  }
}

</mosaic_0001>

<bundles_post_ra>
// kernel: tpu_custom_call.1
= control target key start
LH: loop header
LB: loop body
LE: loop exit
PB: predicated region body
PF: predicated region fallthrough
CT: control target
= control target key end

     0   :  { %8 = vsyncpa [#allocation3], 0  ;;  %s1360_s0 = inlined_call_operand.hbm [shape: bf16[32,32], index: 0, kind: input, shape index: {}]   ;;  %s1361_s1 = inlined_call_operand.hbm [shape: bf16[32,96], index: 1, kind: input, shape index: {}]   ;;  %s1362_s2 = inlined_call_operand.hbm [shape: bf16[32,32], index: 2, kind: input, shape index: {}]   ;;  %s1363_s3 = inlined_call_operand.hbm [shape: f32[32,32], index: 3, kind: output, shape index: {}]  }
   0x1   :  { %9 = vsyncpa [#allocation6], 0 }
   0x2   :  { %10 = vsyncpa [#allocation4], 0  ;;  %s28_s14 = sshll.u32 %s1361_s1, 4  ;;  %s1125_s15 = smov [#allocation5]   ;;  %s29_s14 = int_to_ptr.hbm [resolvable:$true] %s28_s14 }
   0x3   :  { %s30_s16 = sshll.u32 %s1125_s15, 4  ;;  %s15_s19 = sshll.u32 %s1360_s0, 4  ;;  %s31_s16 = int_to_ptr.vmem [resolvable:$true] %s30_s16  ;;  %s16_s19 = int_to_ptr.hbm [resolvable:$true] %s15_s19 }
   0x4   :  { %s1126_s20 = smov 64   ;;  %s1127_s21 = smov 4  }
   0x5   :  { %36 = dma.hbm_to_vmem [thread:$0]  %s29_s14, 256, %s31_s16, [#allocation6], %s1126_s20, %s1126_s20, %s1127_s21  }
   0x6   :  { %s1128_s22 = smov [#allocation2]   ;;  %s41_s1 = sshll.u32 %s1362_s2, 4  ;;  %s42_s1 = int_to_ptr.hbm [resolvable:$true] %s41_s1 }
   0x7   :  { %s17_s23 = sshll.u32 %s1128_s22, 4  ;;  %s1129_s26 = smov [#allocation7]   ;;  %s18_s23 = int_to_ptr.vmem [resolvable:$true] %s17_s23 }
   0x8   :  { %23 = dma.hbm_to_vmem [thread:$0]  %s16_s19, 256, %s18_s23, [#allocation3], %s1126_s20, %s1126_s20, %s1127_s21  }
   0x9   :  { %s43_s27 = sshll.u32 %s1129_s26, 4  ;;  %s44_s27 = int_to_ptr.vmem [resolvable:$true] %s43_s27 }
   0xa   :  { %49 = dma.hbm_to_vmem [thread:$0]  %s42_s1, 256, %s44_s27, [#allocation6], %s1126_s20, %s1126_s20, %s1127_s21  }
   0xb   :  { %1119 = dma.done.wait [#allocation3], 256  }
   0xc   :  { %1120 = vsyncadd [#allocation3], 4294967040 }
   0xd   :  { %1121 = dma.done.wait [#allocation6], 512  }
   0xe   :  { %1122 = vsyncadd [#allocation6], 4294966784  ;;  %v940_v0 = vld [vmem:[#allocation5 + $0x8] sm:$0xff]  ;;  %v939_v1 = vld [vmem:[#allocation5] sm:$0xff]  ;;  %vm93_vm0 = vcmask 261120   ;;  %s1130_s0 = smov 88   ;;  %v123_v25 = vlaneseq }
   0xf   :  { %106 = vmatpush.bf16.msra.mxu0 %v940_v0  ;;  %v937_v2 = vld [vmem:[#allocation2] sm:$0xff]  ;;  %v938_v3 = vld [vmem:[#allocation2 + $0x8] sm:$0xff]  ;;  %s1131_s2 = smov 120   ;;  %s1132_s28 = smov 96   ;;  %vm137_vm1 = vcmask 64512   ;;  %vm189_vm3 = vcmask 130048  }
  0x10   :  { %v124_v26 = vshrl.u32 %v123_v25, 7  ;;  %v127_v27 = vand.u32 127, %v123_v25  ;;  %s1133_s29 = smov 56   ;;  %s1134_s30 = smov 112   ;;  %vm450_vm5 = vcmask 1043456  }
  0x11   :  { %s1135_s4 = smov 80   ;;  %s1136_s5 = smov 104  }
  0x12   :  { %vm1198_vm2 = vcmp.le.s32.totalorder %v127_v27, %v124_v26  ;;  %v125_v33 = vadd.s32 8, %v124_v26  ;;  %s1137_s6 = smov 48   ;;  %s1138_s7 = smov 72  }
  0x13   :  { %107 = vmatpush.bf16.msra.mxu0 %v939_v1  ;;  %s1139_s8 = smov 40   ;;  %s1140_s9 = smov [#allocation8]  }
  0x14   :  { %vm1205_vm4 = vcmp.le.s32.totalorder %v127_v27, %v125_v33  ;;  %s879_s10 = sshll.u32 %s1140_s9, 4  ;;  %s881_s13 = sshll.u32 %s1363_s3, 4  ;;  %s880_s10 = int_to_ptr.vmem [resolvable:$true] %s879_s10  ;;  %s882_s13 = int_to_ptr.hbm [resolvable:$true] %s881_s13 }
  0x15   :  { %s1141_s14 = smov 128   ;;  %s1142_s15 = smov 8  }
  0x16   :  { %911 = vmatmul.msk.bf16.vlgmr.msra.gmra.mxu0 %vm93_vm0, %v937_v2 }
  0x26   :  { %912 = vmatmul.msk.bf16.gmra.mxu0 %vm93_vm0, %v938_v3 }
  0x93   :  { %v109_v4 = vpop.f32.mrf.mxu0 }
  0x94   :  { %v119_v5 = vpack.c.bf16 %v109_v4, %v109_v4 }
  0x96   :  { %v132_v8 = vunpack.c.l.b16 %v119_v5 }
  0x9b   :  { %v111_v6 = vpop.f32.mrf.mxu0 }
  0x9c   :  { %v120_v7 = vpack.c.bf16 %v111_v6, %v111_v6 }
  0x9e   :  { %v133_v9 = vunpack.c.l.b16 %v120_v7 }
  0xa0   :  { %v1180_v10 = vpack.c.b16 %v133_v9, %v132_v8 }
  0xa2   :  { %293 = vrot.lane.b32.xlu1 %v1180_v10, %s1130_s0 }
  0xa3   :  { %v114_v11 = vpop.f32.mrf.mxu0 }
  0xa4   :  { %v121_v12 = vpack.c.bf16 %v114_v11, %v114_v11 }
  0xa6   :  { %v160_v15 = vunpack.c.l.b16 %v121_v12 }
  0xaa   :  { %291 = vrot.lane.b32.xlu1 %v1180_v10, %s1131_s2 }
  0xab   :  { %v116_v13 = vpop.f32.mrf.mxu0 }
  0xac   :  { %v122_v14 = vpack.c.bf16 %v116_v13, %v116_v13 }
  0xae   :  { %v161_v16 = vunpack.c.l.b16 %v122_v14 }
  0xb0   :  { %v1186_v17 = vpack.c.b16 %v161_v16, %v160_v15 }
  0xb2   :  { %163 = vrot.lane.b32.xlu0 %v1186_v17, %s1132_s28 }
  0xba   :  { %135 = vrot.lane.b32.xlu0 %v1180_v10, %s1132_s28 }
 0x114   :  { %v294_v20 = vpop.permute.xlu1 %293 }
 0x115   :  { %v299_v23 = vsel %vm137_vm1, %v294_v20, 0 }
 0x11c   :  { %v292_v24 = vpop.permute.xlu1 %291 }
 0x124   :  { %v164_v18 = vpop.permute.xlu0 %163 }
 0x125   :  { %v169_v19 = vsel %vm137_vm1, %v164_v18, 0 }
 0x126   :  { %178 = vmatpush.bf16.xpose.msra.mxu2 %v169_v19 }
 0x12c   :  { %v136_v21 = vpop.permute.xlu0 %135 }
 0x12d   :  { %914 = vmatmul.msk.bf16.vlgmr.msra.gmra.mxu2 %vm137_vm1, %v1186_v17  ;;  %v142_v22 = vsel %vm137_vm1, %v136_v21, 0 }
 0x12e   :  { %151 = vmatpush.bf16.xpose.msra.mxu1 %v142_v22 }
 0x135   :  { %913 = vmatmul.msk.bf16.vlgmr.msra.gmra.mxu1 %vm137_vm1, %v1180_v10 }
 0x136   :  { %308 = vmatpush.bf16.xpose.msrb.mxu1 %v299_v23 }
 0x145   :  { %917 = vmatmul.msk.bf16.vlgmr.msrb.gmra.mxu1 %vm137_vm1, %v292_v24 }
 0x1b0   :  { %v180_v29 = vpop.f32.mrf.mxu2 }
 0x1b1   :  { %v187_v30 = vsel %vm1198_vm2, %v180_v29, -1e+30 }
 0x1b2   :  { %v153_v31 = vpop.f32.mrf.mxu1  ;;  %v196_v32 = vsel %vm189_vm3, %v187_v30, -inf }
 0x1b3   :  { %197 = vmax.xlane.f32.xlu2 %v196_v32  ;;  %v185_v5 = vsel %vm1198_vm2, %v153_v31, -1e+30 }
 0x1b4   :  { %v190_v6 = vsel %vm189_vm3, %v185_v5, -inf }
 0x1b8   :  { %v182_v35 = vpop.f32.mrf.mxu2 }
 0x1b9   :  { %v188_v36 = vsel %vm1205_vm4, %v182_v35, -1e+30 }
 0x1ba   :  { %v155_v37 = vpop.f32.mrf.mxu1  ;;  %v199_v38 = vsel %vm189_vm3, %v188_v36, -inf }
 0x1bb   :  { %200 = vmax.xlane.f32.xlu2 %v199_v38  ;;  %v186_v3 = vsel %vm1205_vm4, %v155_v37, -1e+30 }
 0x1bc   :  { %v193_v4 = vsel %vm189_vm3, %v186_v3, -inf }
 0x1c2   :  { %v310_v39 = vpop.f32.mrf.mxu1 }
 0x1c3   :  { %v339_v40 = vsel %vm1198_vm2, %v310_v39, -1e+30 }
 0x1c4   :  { %v343_v41 = vsel %vm189_vm3, %v339_v40, -inf }
 0x1c5   :  { %344 = vmax.xlane.f32.xlu0 %v343_v41 }
 0x1ca   :  { %v312_v42 = vpop.f32.mrf.mxu1 }
 0x1cb   :  { %v340_v43 = vsel %vm1205_vm4, %v312_v42, -1e+30 }
 0x1cc   :  { %v346_v44 = vsel %vm189_vm3, %v340_v43, -inf }
 0x1cd   :  { %347 = vmax.xlane.f32.xlu1 %v346_v44 }
 0x1e6   :  { %317 = vrot.lane.b32.xlu1 %v1186_v17, %s1130_s0 }
 0x1ee   :  { %396 = vrot.lane.b32.xlu1 %v1180_v10, %s1133_s29 }
 0x1f6   :  { %501 = vrot.lane.b32.xlu1 %v1180_v10, %s1134_s30 }
 0x226   :  { %v198_v45 = vpop.xlane.xlu2 %197 }
 0x227   :  { %v204_v46 = vsub.f32 %v187_v30, %v198_v45 }
 0x229   :  { %v210_v47 = vmul.f32 1.442695, %v204_v46 }
 0x22b   :  { %959 = vpow2.f32 %v210_v47 }
 0x22e   :  { %v201_v48 = vpop.xlane.xlu2 %200 }
 0x22f   :  { %v205_v49 = vsub.f32 %v188_v36, %v201_v48 }
 0x231   :  { %v960_v50 = vpop.eup %959  ;;  %v212_v51 = vmul.f32 1.442695, %v205_v49 }
 0x232   :  { %v220_v52 = vsel %vm189_vm3, %v960_v50, 0.0 }
 0x233   :  { %961 = vpow2.f32 %v212_v51  ;;  %221 = vadd.xlane.f32.xlu2 %v220_v52 }
 0x238   :  { %v345_v62 = vpop.xlane.xlu0 %344 }
 0x239   :  { %v962_v53 = vpop.eup %961  ;;  %v355_v63 = vsub.f32 %v339_v40, %v345_v62 }
 0x23a   :  { %v223_v54 = vsel %vm189_vm3, %v962_v53, 0.0 }
 0x23b   :  { %224 = vadd.xlane.f32.xlu2 %v223_v54  ;;  %v359_v0 = vmul.f32 1.442695, %v355_v63 }
 0x240   :  { %v348_v55 = vpop.xlane.xlu1 %347 }
 0x241   :  { %v356_v56 = vsub.f32 %v340_v43, %v348_v55 }
 0x243   :  { %v361_v57 = vmul.f32 1.442695, %v356_v56 }
 0x245   :  { %963 = vpow2.f32 %v361_v57 }
 0x246   :  { %965 = vpow2.f32 %v359_v0 }
 0x24b   :  { %v964_v58 = vpop.eup %963 }
 0x24c   :  { %v370_v59 = vsel %vm189_vm3, %v964_v58, 0.0  ;;  %v966_v1 = vpop.eup %965 }
 0x24d   :  { %371 = vadd.xlane.f32.xlu0 %v370_v59  ;;  %v367_v2 = vsel %vm189_vm3, %v966_v1, 0.0 }
 0x253   :  { %268 = vrot.lane.b32.xlu2 %v1186_v17, %s1126_s20 }
 0x258   :  { %v318_v60 = vpop.permute.xlu1 %317 }
 0x259   :  { %v323_v61 = vsel %vm137_vm1, %v318_v60, 0 }
 0x25a   :  { %332 = vmatpush.bf16.xpose.msrb.mxu2 %v323_v61 }
 0x260   :  { %v397_v16 = vpop.permute.xlu1 %396 }
 0x261   :  { %315 = vrot.lane.b32.xlu0 %v1186_v17, %s1131_s2 }
 0x268   :  { %v502_v46 = vpop.permute.xlu1 %501 }
 0x269   :  { %503 = vrot.lane.b32.xlu0 %v1180_v10, %s1135_s4 }
 0x27c   :  { %368 = vadd.xlane.f32.xlu2 %v367_v2 }
 0x284   :  { %194 = vmax.xlane.f32.xlu2 %v193_v4 }
 0x293   :  { %191 = vmax.xlane.f32.xlu0 %v190_v6 }
 0x2a6   :  { %v222_v7 = vpop.xlane.xlu2 %221 }
 0x2a7   :  { %967 = vrcp.f32 %v222_v7 }
 0x2ad   :  { %v968_v9 = vpop.eup %967 }
 0x2ae   :  { %v225_v8 = vpop.xlane.xlu2 %224  ;;  %v232_v11 = vmul.f32 %v968_v9, %v960_v50 }
 0x2af   :  { %969 = vrcp.f32 %v225_v8 }
 0x2b0   :  { %v236_v15 = vpack.c.bf16 %v232_v11, %v232_v11 }
 0x2b2   :  { %v265_v19 = vunpack.c.l.b16 %v236_v15 }
 0x2b5   :  { %v970_v12 = vpop.eup %969 }
 0x2b6   :  { %v269_v13 = vpop.permute.xlu2 %268  ;;  %v233_v14 = vmul.f32 %v970_v12, %v962_v53 }
 0x2b7   :  { %281 = vmatpush.bf16.msra.mxu3 %v269_v13 }
 0x2b8   :  { %v237_v18 = vpack.c.bf16 %v233_v14, %v233_v14 }
 0x2ba   :  { %v266_v20 = vunpack.c.l.b16 %v237_v18 }
 0x2bb   :  { %409 = vmatpush.bf16.msrb.mxu3 %v397_v16 }
 0x2bc   :  { %v267_v21 = vpack.c.b16 %v266_v20, %v265_v19 }
 0x2be   :  { %916 = vmatmul.msk.bf16.vlgmr.msra.gmra.mxu3 %vm189_vm3, %v267_v21 }
 0x2c0   :  { %v372_v22 = vpop.xlane.xlu0 %371 }
 0x2c1   :  { %971 = vrcp.f32 %v372_v22 }
 0x2c7   :  { %v972_v27 = vpop.eup %971 }
 0x2c8   :  { %v384_v29 = vmul.f32 %v972_v27, %v964_v58  ;;  %v443_v58 = vld [vmem:[#allocation7 + $0x4] sm:$0xf] }
 0x2c9   :  { %v452_v59 = vsel %vm450_vm5, %v443_v58, 0 }
 0x2ca   :  { %v388_v31 = vpack.c.bf16 %v384_v29, %v384_v29  ;;  %461 = vmatpush.bf16.msra.mxu1 %v452_v59 }
 0x2cc   :  { %v394_v38 = vunpack.c.l.b16 %v388_v31 }
 0x2d3   :  { %v316_v23 = vpop.permute.xlu0 %315 }
 0x2d4   :  { %918 = vmatmul.msk.bf16.vlgmr.msrb.gmra.mxu2 %vm137_vm1, %v316_v23 }
 0x2db   :  { %v504_v24 = vpop.permute.xlu0 %503 }
 0x2dc   :  { %v509_v25 = vsel %vm137_vm1, %v504_v24, 0 }
 0x2dd   :  { %518 = vmatpush.bf16.xpose.msra.mxu3 %v509_v25 }
 0x2ef   :  { %v369_v26 = vpop.xlane.xlu2 %368 }
 0x2f0   :  { %973 = vrcp.f32 %v369_v26 }
 0x2f6   :  { %v974_v30 = vpop.eup %973 }
 0x2f7   :  { %v383_v32 = vmul.f32 %v974_v30, %v966_v1  ;;  %v195_v33 = vpop.xlane.xlu2 %194  ;;  %v290_v30 = vld [vmem:[#allocation7] sm:$0xf] }
 0x2f8   :  { %v203_v35 = vsub.f32 %v186_v3, %v195_v33  ;;  %v480_v31 = vsel %vm450_vm5, %v290_v30, 0 }
 0x2f9   :  { %v387_v36 = vpack.c.bf16 %v383_v32, %v383_v32  ;;  %489 = vmatpush.bf16.msra.mxu2 %v480_v31 }
 0x2fa   :  { %v208_v37 = vmul.f32 1.442695, %v203_v35 }
 0x2fb   :  { %v393_v39 = vunpack.c.l.b16 %v387_v36 }
 0x2fc   :  { %975 = vpow2.f32 %v208_v37 }
 0x2fd   :  { %v395_v40 = vpack.c.b16 %v394_v38, %v393_v39 }
 0x2ff   :  { %919 = vmatmul.msk.bf16.vlgmr.msrb.gmra.mxu3 %vm189_vm3, %v395_v40 }
 0x302   :  { %v976_v41 = vpop.eup %975 }
 0x303   :  { %v217_v42 = vsel %vm189_vm3, %v976_v41, 0.0 }
 0x304   :  { %218 = vadd.xlane.f32.xlu2 %v217_v42 }
 0x306   :  { %v192_v43 = vpop.xlane.xlu0 %191 }
 0x307   :  { %v202_v44 = vsub.f32 %v185_v5, %v192_v43 }
 0x309   :  { %v206_v45 = vmul.f32 1.442695, %v202_v44 }
 0x30b   :  { %977 = vpow2.f32 %v206_v45 }
 0x30f   :  { %925 = vmatmul.msk.bf16.vlgmr.msra.gmra.mxu3 %vm137_vm1, %v502_v46 }
 0x311   :  { %v978_v47 = vpop.eup %977 }
 0x312   :  { %v214_v48 = vsel %vm189_vm3, %v978_v47, 0.0 }
 0x313   :  { %215 = vadd.xlane.f32.xlu1 %v214_v48 }
 0x31c   :  { %243 = vrot.lane.b32.xlu2 %v1180_v10, %s1126_s20 }
 0x341   :  { %v1250_v49 = vpop.f32.mrf.mxu3 }
 0x349   :  { %v1252_v50 = vpop.f32.mrf.mxu3 }
 0x34a   :  { %v289_v51 = vpack.c.bf16 %v1252_v50, %v1250_v49 }
 0x357   :  { %v334_v52 = vpop.f32.mrf.mxu2 }
 0x358   :  { %v341_v53 = vsel %vm1198_vm2, %v334_v52, -1e+30 }
 0x359   :  { %v349_v54 = vsel %vm189_vm3, %v341_v53, -inf }
 0x35a   :  { %350 = vmax.xlane.f32.xlu0 %v349_v54 }
 0x35f   :  { %v336_v55 = vpop.f32.mrf.mxu2 }
 0x360   :  { %v342_v56 = vsel %vm1205_vm4, %v336_v55, -1e+30 }
 0x361   :  { %v352_v57 = vsel %vm189_vm3, %v342_v56, -inf }
 0x362   :  { %353 = vmax.xlane.f32.xlu2 %v352_v57 }
 0x377   :  { %v219_v60 = vpop.xlane.xlu2 %218 }
 0x378   :  { %979 = vrcp.f32 %v219_v60 }
 0x37a   :  { %525 = vrot.lane.b32.xlu2 %v1186_v17, %s1134_s30 }
 0x37e   :  { %v980_v0 = vpop.eup %979 }
 0x37f   :  { %v244_v61 = vpop.permute.xlu2 %243  ;;  %v231_v1 = vmul.f32 %v980_v0, %v976_v41 }
 0x380   :  { %256 = vmatpush.bf16.msrb.mxu0 %v244_v61 }
 0x381   :  { %v235_v5 = vpack.c.bf16 %v231_v1, %v231_v1 }
 0x382   :  { %v411_v62 = vpop.f32.mrf.mxu3  ;;  %710 = vrot.lane.b32.xlu2 %v1186_v17, %s1136_s5 }
 0x383   :  { %v241_v8 = vunpack.c.l.b16 %v235_v5 }
 0x386   :  { %v216_v63 = vpop.xlane.xlu1 %215 }
 0x387   :  { %981 = vrcp.f32 %v216_v63 }
 0x38a   :  { %v413_v2 = vpop.f32.mrf.mxu3 }
 0x38b   :  { %v441_v3 = vpack.c.bf16 %v413_v2, %v411_v62 }
 0x38d   :  { %v982_v4 = vpop.eup %981  ;;  %921 = vmatmul.msk.bf16.vlgmr.msra.gmra.mxu1 %vm137_vm1, %v441_v3 }
 0x38e   :  { %v230_v6 = vmul.f32 %v982_v4, %v978_v47 }
 0x390   :  { %v234_v7 = vpack.c.bf16 %v230_v6, %v230_v6 }
 0x392   :  { %v240_v9 = vunpack.c.l.b16 %v234_v7  ;;  %v520_v11 = vpop.f32.mrf.mxu3 }
 0x393   :  { %v549_v12 = vsel %vm1198_vm2, %v520_v11, -1e+30 }
 0x394   :  { %v553_v13 = vsel %vm189_vm3, %v549_v12, -inf  ;;  %v242_v14 = vpack.c.b16 %v241_v8, %v240_v9 }
 0x395   :  { %554 = vmax.xlane.f32.xlu1 %v553_v13 }
 0x396   :  { %915 = vmatmul.msk.bf16.vlgmr.msrb.gmra.mxu0 %vm189_vm3, %v242_v14 }
 0x39a   :  { %v522_v26 = vpop.f32.mrf.mxu3 }
 0x39b   :  { %v550_v27 = vsel %vm1205_vm4, %v522_v26, -1e+30 }
 0x39c   :  { %v556_v29 = vsel %vm189_vm3, %v550_v27, -inf }
 0x3cd   :  { %v351_v15 = vpop.xlane.xlu0 %350 }
 0x3ce   :  { %v357_v16 = vsub.f32 %v341_v53, %v351_v15 }
 0x3d0   :  { %v363_v18 = vmul.f32 1.442695, %v357_v16 }
 0x3d2   :  { %983 = vpow2.f32 %v363_v18 }
 0x3d5   :  { %v354_v19 = vpop.xlane.xlu2 %353 }
 0x3d6   :  { %v358_v20 = vsub.f32 %v342_v56, %v354_v19 }
 0x3d8   :  { %v984_v21 = vpop.eup %983  ;;  %v365_v22 = vmul.f32 1.442695, %v358_v20 }
 0x3d9   :  { %v373_v23 = vsel %vm189_vm3, %v984_v21, 0.0 }
 0x3da   :  { %985 = vpow2.f32 %v365_v22  ;;  %374 = vadd.xlane.f32.xlu1 %v373_v23 }
 0x3dd   :  { %v526_v63 = vpop.permute.xlu2 %525 }
 0x3e0   :  { %v986_v24 = vpop.eup %985 }
 0x3e1   :  { %v376_v25 = vsel %vm189_vm3, %v986_v24, 0.0 }
 0x3e2   :  { %377 = vadd.xlane.f32.xlu0 %v376_v25 }
 0x3e5   :  { %v711_v22 = vpop.permute.xlu2 %710 }
 0x3ea   :  { %557 = vmax.xlane.f32.xlu0 %v556_v29 }
 0x3f3   :  { %421 = vrot.lane.b32.xlu1 %v1186_v17, %s1133_s29 }
 0x3fb   :  { %606 = vrot.lane.b32.xlu1 %v1180_v10, %s1137_s6 }
 0x3fe   :  { %527 = vrot.lane.b32.xlu0 %v1186_v17, %s1135_s4 }
 0x403   :  { %688 = vrot.lane.b32.xlu1 %v1180_v10, %s1138_s7 }
 0x408   :  { %v555_v32 = vpop.xlane.xlu1 %554 }
 0x409   :  { %v565_v35 = vsub.f32 %v549_v12, %v555_v32 }
 0x40b   :  { %712 = vrot.lane.b32.xlu1 %v1186_v17, %s1138_s7  ;;  %v569_v36 = vmul.f32 1.442695, %v565_v35 }
 0x40d   :  { %987 = vpow2.f32 %v569_v36 }
 0x413   :  { %v258_v33 = vpop.f32.mrf.mxu0  ;;  %v988_v39 = vpop.eup %987 }
 0x414   :  { %v577_v40 = vsel %vm189_vm3, %v988_v39, 0.0 }
 0x41b   :  { %v260_v37 = vpop.f32.mrf.mxu0 }
 0x41c   :  { %v288_v38 = vpack.c.bf16 %v260_v37, %v258_v33 }
 0x41e   :  { %923 = vmatmul.msk.bf16.vlgmr.msra.gmra.mxu2 %vm137_vm1, %v288_v38 }
 0x428   :  { %578 = vadd.xlane.f32.xlu0 %v577_v40 }
 0x42e   :  { %924 = vmatmul.msk.bf16.gmra.mxu2 %vm137_vm1, %v289_v51 }
 0x44d   :  { %v375_v41 = vpop.xlane.xlu1 %374 }
 0x44e   :  { %989 = vrcp.f32 %v375_v41 }
 0x454   :  { %v990_v43 = vpop.eup %989 }
 0x455   :  { %v378_v42 = vpop.xlane.xlu0 %377  ;;  %v385_v45 = vmul.f32 %v990_v43, %v984_v21 }
 0x456   :  { %991 = vrcp.f32 %v378_v42 }
 0x457   :  { %v389_v54 = vpack.c.bf16 %v385_v45, %v385_v45 }
 0x459   :  { %v418_v56 = vunpack.c.l.b16 %v389_v54 }
 0x45c   :  { %v992_v44 = vpop.eup %991 }
 0x45d   :  { %v386_v46 = vmul.f32 %v992_v44, %v986_v24  ;;  %v558_v47 = vpop.xlane.xlu0 %557 }
 0x45e   :  { %v566_v48 = vsub.f32 %v550_v27, %v558_v47  ;;  %v653_v27 = vld [vmem:[#allocation7 + $0x8] sm:$0xf] }
 0x45f   :  { %v390_v52 = vpack.c.bf16 %v386_v46, %v386_v46  ;;  %v661_v29 = vsel %vm450_vm5, %v653_v27, 0 }
 0x460   :  { %v571_v53 = vmul.f32 1.442695, %v566_v48  ;;  %670 = vmatpush.bf16.msrb.mxu1 %v661_v29 }
 0x461   :  { %v419_v55 = vunpack.c.l.b16 %v390_v52 }
 0x462   :  { %993 = vpow2.f32 %v571_v53 }
 0x463   :  { %v420_v49 = vpack.c.b16 %v419_v55, %v418_v56 }
 0x465   :  { %v422_v57 = vpop.permute.xlu1 %421 }
 0x466   :  { %434 = vmatpush.bf16.msra.mxu0 %v422_v57 }
 0x468   :  { %v994_v50 = vpop.eup %993 }
 0x469   :  { %920 = vmatmul.msk.bf16.vlgmr.msra.gmra.mxu0 %vm189_vm3, %v420_v49  ;;  %v580_v51 = vsel %vm189_vm3, %v994_v50, 0.0 }
 0x46a   :  { %581 = vadd.xlane.f32.xlu0 %v580_v51 }
 0x46d   :  { %v607_v58 = vpop.permute.xlu1 %606 }
 0x46e   :  { %619 = vmatpush.bf16.msrb.mxu3 %v607_v58 }
 0x470   :  { %v528_v59 = vpop.permute.xlu0 %527 }
 0x471   :  { %v533_v60 = vsel %vm137_vm1, %v528_v59, 0 }
 0x472   :  { %542 = vmatpush.bf16.xpose.msrb.mxu0 %v533_v60 }
 0x475   :  { %v689_v61 = vpop.permute.xlu1 %688 }
 0x476   :  { %v694_v62 = vsel %vm137_vm1, %v689_v61, 0 }
 0x477   :  { %703 = vmatpush.bf16.xpose.msrb.mxu2 %v694_v62 }
 0x479   :  { %926 = vmatmul.msk.bf16.vlgmr.msrb.gmra.mxu0 %vm137_vm1, %v526_v63 }
 0x47d   :  { %v713_v0 = vpop.permute.xlu1 %712 }
 0x47e   :  { %v718_v1 = vsel %vm137_vm1, %v713_v0, 0  ;;  %686 = vrot.lane.b32.xlu0 %v1180_v10, %s1136_s5 }
 0x47f   :  { %727 = vmatpush.bf16.xpose.msra.mxu3 %v718_v1 }
 0x49b   :  { %v579_v2 = vpop.xlane.xlu0 %578 }
 0x49c   :  { %995 = vrcp.f32 %v579_v2 }
 0x4a1   :  { %v1310_v26 = vpop.f32.mrf.mxu2 }
 0x4a2   :  { %v996_v4 = vpop.eup %995 }
 0x4a3   :  { %v593_v5 = vmul.f32 %v996_v4, %v988_v39 }
 0x4a5   :  { %v597_v7 = vpack.c.bf16 %v593_v5, %v593_v5 }
 0x4a7   :  { %v603_v12 = vunpack.c.l.b16 %v597_v7 }
 0x4a9   :  { %v1313_v30 = vpop.f32.mrf.mxu2 }
 0x4b1   :  { %v1315_v31 = vpop.f32.mrf.mxu2 }
 0x4b9   :  { %v1317_v32 = vpop.f32.mrf.mxu2 }
 0x4dd   :  { %v582_v3 = vpop.xlane.xlu0 %581 }
 0x4de   :  { %997 = vrcp.f32 %v582_v3 }
 0x4e4   :  { %v998_v6 = vpop.eup %997 }
 0x4e5   :  { %v594_v8 = vmul.f32 %v998_v6, %v994_v50 }
 0x4e6   :  { %v436_v9 = vpop.f32.mrf.mxu0 }
 0x4e7   :  { %v598_v11 = vpack.c.bf16 %v594_v8, %v594_v8 }
 0x4e9   :  { %v604_v13 = vunpack.c.l.b16 %v598_v11 }
 0x4eb   :  { %v605_v14 = vpack.c.b16 %v604_v13, %v603_v12 }
 0x4ed   :  { %927 = vmatmul.msk.bf16.vlgmr.msrb.gmra.mxu3 %vm189_vm3, %v605_v14 }
 0x4ee   :  { %v438_v15 = vpop.f32.mrf.mxu0 }
 0x4ef   :  { %v442_v16 = vpack.c.bf16 %v438_v15, %v436_v9 }
 0x4f0   :  { %v687_v18 = vpop.permute.xlu0 %686 }
 0x4f1   :  { %922 = vmatmul.msk.bf16.gmra.mxu1 %vm137_vm1, %v442_v16  ;;  %931 = vmatmul.msk.bf16.vlgmr.msrb.gmra.mxu2 %vm137_vm1, %v687_v18 }
 0x4f6   :  { %v544_v19 = vpop.f32.mrf.mxu0 }
 0x4f7   :  { %v551_v20 = vsel %vm1198_vm2, %v544_v19, -1e+30 }
 0x4f8   :  { %v559_v21 = vsel %vm189_vm3, %v551_v20, -inf }
 0x4f9   :  { %560 = vmax.xlane.f32.xlu0 %v559_v21 }
 0x4fd   :  { %932 = vmatmul.msk.bf16.vlgmr.msra.gmra.mxu3 %vm137_vm1, %v711_v22 }
 0x4fe   :  { %v546_v23 = vpop.f32.mrf.mxu0 }
 0x4ff   :  { %v552_v24 = vsel %vm1205_vm4, %v546_v23, -1e+30 }
 0x500   :  { %v562_v25 = vsel %vm189_vm3, %v552_v24, -inf }
 0x501   :  { %563 = vmax.xlane.f32.xlu1 %v562_v25 }
 0x56c   :  { %v561_v35 = vpop.xlane.xlu0 %560 }
 0x56d   :  { %v567_v37 = vsub.f32 %v551_v20, %v561_v35 }
 0x56f   :  { %v573_v42 = vmul.f32 1.442695, %v567_v37 }
 0x570   :  { %v621_v33 = vpop.f32.mrf.mxu3 }
 0x571   :  { %999 = vpow2.f32 %v573_v42 }
 0x574   :  { %v705_v36 = vpop.f32.mrf.mxu2  ;;  %v564_v39 = vpop.xlane.xlu1 %563 }
 0x575   :  { %v734_v38 = vsel %vm1198_vm2, %v705_v36, -1e+30  ;;  %v568_v43 = vsub.f32 %v552_v24, %v564_v39 }
 0x576   :  { %v738_v40 = vsel %vm189_vm3, %v734_v38, -inf }
 0x577   :  { %739 = vmax.xlane.f32.xlu2 %v738_v40  ;;  %v575_v46 = vmul.f32 1.442695, %v568_v43  ;;  %v1000_v55 = vpop.eup %999 }
 0x578   :  { %v623_v41 = vpop.f32.mrf.mxu3  ;;  %v583_v56 = vsel %vm189_vm3, %v1000_v55, 0.0 }
 0x579   :  { %v651_v44 = vpack.c.bf16 %v623_v41, %v621_v33  ;;  %1001 = vpow2.f32 %v575_v46 }
 0x57b   :  { %929 = vmatmul.msk.bf16.vlgmr.msrb.gmra.mxu1 %vm137_vm1, %v651_v44 }
 0x57c   :  { %v707_v45 = vpop.f32.mrf.mxu2 }
 0x57d   :  { %v735_v47 = vsel %vm1205_vm4, %v707_v45, -1e+30 }
 0x57e   :  { %v741_v48 = vsel %vm189_vm3, %v735_v47, -inf }
 0x57f   :  { %742 = vmax.xlane.f32.xlu0 %v741_v48  ;;  %v1002_v57 = vpop.eup %1001 }
 0x580   :  { %v729_v52 = vpop.f32.mrf.mxu3  ;;  %v586_v51 = vsel %vm189_vm3, %v1002_v57, 0.0 }
 0x581   :  { %v736_v53 = vsel %vm1198_vm2, %v729_v52, -1e+30 }
 0x582   :  { %v744_v54 = vsel %vm189_vm3, %v736_v53, -inf }
 0x583   :  { %745 = vmax.xlane.f32.xlu1 %v744_v54 }
 0x587   :  { %584 = vadd.xlane.f32.xlu0 %v583_v56 }
 0x588   :  { %v731_v49 = vpop.f32.mrf.mxu3 }
 0x589   :  { %v737_v50 = vsel %vm1205_vm4, %v731_v49, -1e+30 }
 0x58a   :  { %v747_v58 = vsel %vm189_vm3, %v737_v50, -inf }
 0x58b   :  { %587 = vadd.xlane.f32.xlu1 %v586_v51  ;;  %748 = vmax.xlane.f32.xlu2 %v747_v58  ;;  %v838_v58 = vld [vmem:[#allocation7 + $0xc] sm:$0xf] }
 0x5a3   :  { %631 = vrot.lane.b32.xlu2 %v1186_v17, %s1137_s6 }
 0x5ea   :  { %v740_v28 = vpop.xlane.xlu2 %739 }
 0x5eb   :  { %v750_v59 = vsub.f32 %v734_v38, %v740_v28  ;;  %v846_v28 = vsel %vm450_vm5, %v838_v58, 0 }
 0x5ec   :  { %855 = vmatpush.bf16.msrb.mxu3 %v846_v28 }
 0x5ed   :  { %v754_v60 = vmul.f32 1.442695, %v750_v59 }
 0x5ef   :  { %1003 = vpow2.f32 %v754_v60 }
 0x5f2   :  { %v743_v61 = vpop.xlane.xlu0 %742 }
 0x5f3   :  { %v751_v62 = vsub.f32 %v735_v47, %v743_v61 }
 0x5f5   :  { %v1004_v63 = vpop.eup %1003  ;;  %v756_v0 = vmul.f32 1.442695, %v751_v62 }
 0x5f6   :  { %v746_v1 = vpop.xlane.xlu1 %745  ;;  %v762_v34 = vsel %vm189_vm3, %v1004_v63, 0.0 }
 0x5f7   :  { %1005 = vpow2.f32 %v756_v0  ;;  %v752_v2 = vsub.f32 %v736_v53, %v746_v1  ;;  %763 = vadd.xlane.f32.xlu0 %v762_v34  ;;  %v463_v1 = vpop.f32.mrf.mxu1 }
 0x5f9   :  { %v758_v3 = vmul.f32 1.442695, %v752_v2 }
 0x5fa   :  { %v585_v4 = vpop.xlane.xlu0 %584 }
 0x5fb   :  { %1007 = vpow2.f32 %v758_v3 }
 0x5fc   :  { %1009 = vrcp.f32 %v585_v4 }
 0x5fd   :  { %v1006_v5 = vpop.eup %1005 }
 0x5fe   :  { %v588_v6 = vpop.xlane.xlu1 %587  ;;  %v749_v7 = vpop.xlane.xlu2 %748  ;;  %v765_v8 = vsel %vm189_vm3, %v1006_v5, 0.0 }
 0x5ff   :  { %1011 = vrcp.f32 %v588_v6  ;;  %v753_v9 = vsub.f32 %v737_v50, %v749_v7  ;;  %766 = vadd.xlane.f32.xlu1 %v765_v8  ;;  %v465_v34 = vpop.f32.mrf.mxu1 }
 0x601   :  { %v1008_v11 = vpop.eup %1007  ;;  %v760_v12 = vmul.f32 1.442695, %v753_v9 }
 0x602   :  { %v1010_v13 = vpop.eup %1009  ;;  %v768_v14 = vsel %vm189_vm3, %v1008_v11, 0.0 }
 0x603   :  { %v595_v15 = vmul.f32 %v1010_v13, %v1000_v55  ;;  %1013 = vpow2.f32 %v760_v12  ;;  %769 = vadd.xlane.f32.xlu0 %v768_v14 }
 0x605   :  { %v1012_v16 = vpop.eup %1011  ;;  %v599_v18 = vpack.c.bf16 %v595_v15, %v595_v15 }
 0x606   :  { %v596_v19 = vmul.f32 %v1012_v16, %v1002_v57  ;;  %v632_v20 = vpop.permute.xlu2 %631 }
 0x607   :  { %644 = vmatpush.bf16.msra.mxu0 %v632_v20  ;;  %v628_v23 = vunpack.c.l.b16 %v599_v18  ;;  %v468_v2 = vpop.f32.mrf.mxu1 }
 0x608   :  { %v600_v21 = vpack.c.bf16 %v596_v19, %v596_v19  ;;  %v497_v16 = vadd.f32 %v1315_v31, %v468_v2 }
 0x609   :  { %v1014_v22 = vpop.eup %1013 }
 0x60a   :  { %v629_v24 = vunpack.c.l.b16 %v600_v21  ;;  %v771_v25 = vsel %vm189_vm3, %v1014_v22, 0.0 }
 0x60b   :  { %772 = vadd.xlane.f32.xlu1 %v771_v25 }
 0x60c   :  { %v630_v27 = vpack.c.b16 %v629_v24, %v628_v23 }
 0x60e   :  { %928 = vmatmul.msk.bf16.vlgmr.msra.gmra.mxu0 %vm189_vm3, %v630_v27 }
 0x60f   :  { %v470_v3 = vpop.f32.mrf.mxu1 }
 0x610   :  { %v499_v21 = vadd.f32 %v1317_v32, %v470_v3 }
 0x617   :  { %791 = vrot.lane.b32.xlu0 %v1180_v10, %s1139_s8  ;;  %v672_v4 = vpop.f32.mrf.mxu1 }
 0x61f   :  { %v674_v9 = vpop.f32.mrf.mxu1 }
 0x624   :  { %816 = vrot.lane.b32.xlu1 %v1186_v17, %s1139_s8 }
 0x66a   :  { %v764_v33 = vpop.xlane.xlu0 %763 }
 0x672   :  { %v767_v29 = vpop.xlane.xlu1 %766 }
 0x673   :  { %1015 = vrcp.f32 %v767_v29 }
 0x674   :  { %1017 = vrcp.f32 %v764_v33 }
 0x676   :  { %v770_v40 = vpop.xlane.xlu0 %769 }
 0x679   :  { %v1016_v35 = vpop.eup %1015 }
 0x67a   :  { %v1018_v36 = vpop.eup %1017  ;;  %v779_v37 = vmul.f32 %v1016_v35, %v1006_v5  ;;  %v492_v5 = vadd.f32 %v1310_v26, %v463_v1 }
 0x67b   :  { %v778_v39 = vmul.f32 %v1018_v36, %v1004_v63 }
 0x67c   :  { %v783_v41 = vpack.c.bf16 %v779_v37, %v779_v37  ;;  %v682_v6 = vadd.f32 %v672_v4, %v492_v5 }
 0x67d   :  { %v782_v42 = vpack.c.bf16 %v778_v39, %v778_v39 }
 0x67e   :  { %v773_v38 = vpop.xlane.xlu1 %772  ;;  %v789_v43 = vunpack.c.l.b16 %v783_v41 }
 0x67f   :  { %1019 = vrcp.f32 %v773_v38  ;;  %v788_v45 = vunpack.c.l.b16 %v782_v42 }
 0x680   :  { %1021 = vrcp.f32 %v770_v40 }
 0x681   :  { %v790_v46 = vpack.c.b16 %v789_v43, %v788_v45 }
 0x685   :  { %v1020_v44 = vpop.eup %1019 }
 0x686   :  { %v1022_v17 = vpop.eup %1021  ;;  %v781_v48 = vmul.f32 %v1020_v44, %v1014_v22 }
 0x687   :  { %v780_v52 = vmul.f32 %v1022_v17, %v1008_v11  ;;  %v494_v11 = vadd.f32 %v1313_v30, %v465_v34 }
 0x688   :  { %v785_v53 = vpack.c.bf16 %v781_v48, %v781_v48 }
 0x689   :  { %v792_v10 = vpop.permute.xlu0 %791  ;;  %v784_v54 = vpack.c.bf16 %v780_v52, %v780_v52  ;;  %v683_v12 = vadd.f32 %v674_v9, %v494_v11 }
 0x68a   :  { %804 = vmatpush.bf16.msrb.mxu0 %v792_v10  ;;  %v814_v56 = vunpack.c.l.b16 %v785_v53 }
 0x68b   :  { %v646_v47 = vpop.f32.mrf.mxu0  ;;  %v813_v49 = vunpack.c.l.b16 %v784_v54 }
 0x68d   :  { %933 = vmatmul.msk.bf16.vlgmr.msrb.gmra.mxu0 %vm189_vm3, %v790_v46  ;;  %v815_v51 = vpack.c.b16 %v814_v56, %v813_v49 }
 0x693   :  { %v648_v55 = vpop.f32.mrf.mxu0 }
 0x694   :  { %v652_v57 = vpack.c.bf16 %v648_v55, %v646_v47 }
 0x696   :  { %v817_v50 = vpop.permute.xlu1 %816  ;;  %930 = vmatmul.msk.bf16.gmra.mxu1 %vm137_vm1, %v652_v57 }
 0x697   :  { %829 = vmatpush.bf16.msra.mxu2 %v817_v50 }
 0x69a   :  { %934 = vmatmul.msk.bf16.vlgmr.msra.gmra.mxu2 %vm189_vm3, %v815_v51 }
 0x70a   :  { %v806_v59 = vpop.f32.mrf.mxu0 }
 0x712   :  { %v808_v60 = vpop.f32.mrf.mxu0 }
 0x713   :  { %v836_v61 = vpack.c.bf16 %v808_v60, %v806_v59  ;;  %v677_v15 = vpop.f32.mrf.mxu1 }
 0x714   :  { %v684_v18 = vadd.f32 %v677_v15, %v497_v16 }
 0x715   :  { %935 = vmatmul.msk.bf16.vlgmr.msrb.gmra.mxu3 %vm137_vm1, %v836_v61 }
 0x71b   :  { %v679_v26 = vpop.f32.mrf.mxu1 }
 0x71c   :  { %v685_v30 = vadd.f32 %v679_v26, %v499_v21 }
 0x71d   :  { %v831_v62 = vpop.f32.mrf.mxu2 }
 0x725   :  { %v833_v63 = vpop.f32.mrf.mxu2 }
 0x726   :  { %v837_v0 = vpack.c.bf16 %v833_v63, %v831_v62 }
 0x728   :  { %936 = vmatmul.msk.bf16.gmra.mxu3 %vm137_vm1, %v837_v0 }
 0x798   :  { %v857_v7 = vpop.f32.mrf.mxu3 }
 0x799   :  { %v867_v8 = vadd.f32 %v857_v7, %v682_v6 }
 0x79b   :  { %871 = vst.msk [vmem:[#allocation8] sm:$0xff] %vm93_vm0, %v867_v8 }
 0x7a0   :  { %v859_v13 = vpop.f32.mrf.mxu3 }
 0x7a1   :  { %v868_v14 = vadd.f32 %v859_v13, %v683_v12 }
 0x7a3   :  { %872 = vst.msk [vmem:[#allocation8 + $0x8] sm:$0xff] %vm93_vm0, %v868_v14 }
 0x7ab   :  { %v862_v19 = vpop.f32.mrf.mxu3 }
 0x7ac   :  { %v869_v20 = vadd.f32 %v862_v19, %v684_v18 }
 0x7ae   :  { %873 = vst.msk [vmem:[#allocation8 + $0x10] sm:$0xff] %vm93_vm0, %v869_v20 }
 0x7b3   :  { %v864_v22 = vpop.f32.mrf.mxu3 }
 0x7b4   :  { %v870_v23 = vadd.f32 %v864_v22, %v685_v30 }
 0x7b6   :  { %874 = vst.msk [vmem:[#allocation8 + $0x18] sm:$0xff] %vm93_vm0, %v870_v23 }
 0x7b7   :  { %887 = dma.vmem_to_hbm [thread:$0]  %s880_s10, 512, %s882_s13, [#allocation4], %s1141_s14, %s1141_s14, %s1142_s15  }
 0x7b8   :  { %1123 = dma.done.wait [#allocation4], 512  }
 0x7b9   :  { %1124 = vsyncadd [#allocation4], 4294966784 }
 0x7ba   :  { %892 = vsyncpa [#allocation3], 1 }
 0x7bb   :  { %893 = vsyncpa [#allocation6], 1 }
 0x7bc   :  { %894 = vsyncpa [#allocation4], 1 }

</bundles_post_ra>
